<compile_context>
chip_gen: v7x
topology: tpu7x:2x2x1
jax: 0.10.0
libtpu: 0.0.40
codegen_flags: <defaults>
</compile_context>

<pallas_src>
import functools
import math

import jax
import jax.numpy as jnp
from jax.experimental import pallas as pl
from jax.experimental.pallas import tpu as pltpu

LANE = 128


# ---------------------------------------------------------------------------
# Kernels
# ---------------------------------------------------------------------------
def gin_layer1_kernel(a_ref, xw1_ref, b1_ref, w2_ref, hw2_ref, acc_ref):
    """acc = A_hat @ XW1 (K-accumulated); finalize: HW2 = relu(acc + b1) @ W2."""
    k = pl.program_id(1)
    block_k = a_ref.shape[1]

    @pl.when(k == 0)
    def _():
        acc_ref[...] = jnp.zeros_like(acc_ref)

    a = a_ref[...]
    start = pl.multiple_of(k * block_k, block_k)
    feat = xw1_ref[pl.ds(start, block_k), :]   # K stripe of the resident feature
    if a.dtype != feat.dtype:                  # exact f32 path: widen bf16 A tile
        a = a.astype(feat.dtype)               # bf16 path: native bf16 MXU, no cast
    acc_ref[...] += jnp.dot(a, feat, preferred_element_type=jnp.float32)

    @pl.when(k == pl.num_programs(1) - 1)
    def _():
        h = jnp.maximum(acc_ref[...] + b1_ref[...], 0.0)
        hw2 = jnp.dot(h, w2_ref[...], preferred_element_type=jnp.float32)
        hw2_ref[...] = hw2.astype(hw2_ref.dtype)


def gin_layer2_kernel(a_ref, hw2_ref, b2_ref, o_ref, acc_ref, *, num_classes):
    """acc = A_hat @ HW2; finalize: log_softmax(acc + b2), padded lanes masked."""
    k = pl.program_id(1)
    block_k = a_ref.shape[1]

    @pl.when(k == 0)
    def _():
        acc_ref[...] = jnp.zeros_like(acc_ref)

    a = a_ref[...]
    start = pl.multiple_of(k * block_k, block_k)
    feat = hw2_ref[pl.ds(start, block_k), :]
    if a.dtype != feat.dtype:
        a = a.astype(feat.dtype)
    acc_ref[...] += jnp.dot(a, feat, preferred_element_type=jnp.float32)

    @pl.when(k == pl.num_programs(1) - 1)
    def _():
        z = acc_ref[...] + b2_ref[...]
        # Mask padded class lanes to -inf BEFORE max / logsumexp.
        lane = jax.lax.broadcasted_iota(jnp.int32, z.shape, dimension=1)
        z = jnp.where(lane < num_classes, z, -jnp.inf)
        m = jnp.max(z, axis=-1, keepdims=True)
        s = z - m
        lse = jnp.log(jnp.sum(jnp.exp(s), axis=-1, keepdims=True))
        o_ref[...] = s - lse


# ---------------------------------------------------------------------------
# Wrapper helpers
# ---------------------------------------------------------------------------
def _round_up(n, m):
    return ((n + m - 1) // m) * m


def _pad_to(a, shape):
    widths = [(0, t - s) for s, t in zip(a.shape, shape)]
    return jnp.pad(a, widths) if any(w[1] for w in widths) else a


def _auto_blocks(n):
    """Pick (Np, block_m, block_k): block_k a multiple of block_m (no LCM
    blow-up), >=2 row tiles when possible (v7x megacore balance)."""
    block_m = 256 if _round_up(n, 256) >= 512 else 128
    np_ = _round_up(max(n, block_m), block_m)
    block_k = block_m
    for mult in (8, 4, 2):
        cand = block_m * mult
        if cand <= 1024 and np_ % cand == 0:
            block_k = cand
            break
    return np_, block_m, block_k


def _vmem_estimate(np_, bm, bk, feat_w, out_w, feat_bytes, const_bytes):
    a_stream = 2 * bm * bk * 2               # bf16 A stripe, double-buffered
    feats = 2 * np_ * feat_w * feat_bytes    # resident feature (budget 2 bufs)
    acc = bm * feat_w * 4
    outs = 2 * bm * out_w * 4
    return a_stream + feats + acc + outs + 2 * const_bytes


# ---------------------------------------------------------------------------
# Forward
# ---------------------------------------------------------------------------
def gin_forward(adj, x, w1, b1, w2, b2, *, block_m=None, block_k=None,
                agg_in_bf16=False):
    """adj: [N,N] 0/1 dense adjacency WITHOUT self loops; x: [N,F];
    w1: [F,H], b1: [H] or [1,H]; w2: [H,C], b2: [C] or [1,C].
    Returns log-softmax logits [N, C] float32.
    agg_in_bf16=True: native bf16 MXU aggregation (inference precision)."""
    N, F = x.shape
    H = w1.shape[1]
    C = w2.shape[1]

    if block_m is None or block_k is None:
        Np, bm, bk = _auto_blocks(N)
    else:
        bm, bk = block_m, block_k
        assert bm % 8 == 0 and bk % LANE == 0
        Np = _round_up(N, math.lcm(bm, bk))

    Hp = _round_up(max(H, LANE), LANE)
    Cp = _round_up(max(C, LANE), LANE)
    feat_dtype = jnp.bfloat16 if agg_in_bf16 else jnp.float32
    feat_bytes = 2 if agg_in_bf16 else 4

    # A_hat = A + I built directly in bf16 (exact for 0/1) -- no f32 NxN
    # intermediate.  Padded rows/cols stay zero.
    a_hat = adj.astype(jnp.bfloat16) + jnp.eye(N, dtype=jnp.bfloat16)
    a_hat = _pad_to(a_hat, (Np, Np))

    # Reassociation: stream XW1 = x @ W1 (tiny XLA matmul) instead of x.
    xw1 = jnp.dot(x.astype(jnp.float32), w1.astype(jnp.float32))
    xw1p = _pad_to(xw1, (Np, Hp)).astype(feat_dtype)

    b1p = _pad_to(jnp.reshape(b1.astype(jnp.float32), (1, -1)), (1, Hp))
    w2p = _pad_to(w2.astype(jnp.float32), (Hp, Cp))
    b2p = _pad_to(jnp.reshape(b2.astype(jnp.float32), (1, -1)), (1, Cp))

    grid = (Np // bm, Np // bk)

    est = max(
        _vmem_estimate(Np, bm, bk, Hp, Cp, feat_bytes,
                       Hp * Cp * 4 + Hp * 4),          # layer 1 (+ W2, b1)
        _vmem_estimate(Np, bm, bk, Cp, Cp, feat_bytes, Cp * 4))  # layer 2 (+ b2)
    vmem_limit = int(max(est + (4 << 20), 32 << 20))   # explicit budget (v7x: 64 MiB phys)

    compiler_params = pltpu.CompilerParams(
        dimension_semantics=("parallel", "arbitrary"),
        vmem_limit_bytes=vmem_limit)

    # ---- layer 1: HW2 = relu(A_hat @ XW1 + b1) @ W2 ----
    hw2 = pl.pallas_call(
        gin_layer1_kernel,
        out_shape=jax.ShapeDtypeStruct((Np, Cp), feat_dtype),
        grid=grid,
        in_specs=[
            pl.BlockSpec((bm, bk), lambda i, k: (i, k)),   # A_hat stripe (bf16)
            pl.BlockSpec((Np, Hp), lambda i, k: (0, 0)),   # XW1 resident in VMEM
            pl.BlockSpec((1, Hp), lambda i, k: (0, 0)),    # b1 resident
            pl.BlockSpec((Hp, Cp), lambda i, k: (0, 0)),   # W2 resident
        ],
        out_specs=pl.BlockSpec((bm, Cp), lambda i, k: (i, 0)),
        scratch_shapes=[pltpu.VMEM((bm, Hp), jnp.float32)],
        compiler_params=compiler_params,
    )(a_hat, xw1p, b1p, w2p)

    # ---- layer 2: out = log_softmax(A_hat @ HW2 + b2) ----
    out = pl.pallas_call(
        functools.partial(gin_layer2_kernel, num_classes=C),
        out_shape=jax.ShapeDtypeStruct((Np, Cp), jnp.float32),
        grid=grid,
        in_specs=[
            pl.BlockSpec((bm, bk), lambda i, k: (i, k)),   # A_hat stripe (bf16)
            pl.BlockSpec((Np, Cp), lambda i, k: (0, 0)),   # HW2 resident in VMEM
            pl.BlockSpec((1, Cp), lambda i, k: (0, 0)),    # b2 resident
        ],
        out_specs=pl.BlockSpec((bm, Cp), lambda i, k: (i, 0)),
        scratch_shapes=[pltpu.VMEM((bm, Cp), jnp.float32)],
        compiler_params=compiler_params,
    )(a_hat, hw2, b2p)

    return out[:N, :C]


# ---------------------------------------------------------------------------
# References + demo
# ---------------------------------------------------------------------------
def _reference(adj, x, w1, b1, w2, b2):
    agg1 = adj @ x
    h = jnp.maximum((x + agg1) @ w1 + b1, 0.0)
    agg2 = adj @ h
    z = (h + agg2) @ w2 + b2
    return jax.nn.log_softmax(z, axis=-1)


def _reference_bf16(adj, x, w1, b1, w2, b2):
    """Emulates the agg_in_bf16 kernel path (bf16 MXU inputs, f32 accumulation)."""
    n = x.shape[0]
    a_hat = adj.astype(jnp.bfloat16) + jnp.eye(n, dtype=jnp.bfloat16)
    xw1 = jnp.dot(x, w1).astype(jnp.bfloat16)
    h = jnp.maximum(
        jnp.dot(a_hat, xw1, preferred_element_type=jnp.float32) + b1, 0.0)
    hw2 = jnp.dot(h, w2).astype(jnp.bfloat16)
    z = jnp.dot(a_hat, hw2, preferred_element_type=jnp.float32) + b2
    return jax.nn.log_softmax(z, axis=-1)


if __name__ == "__main__":
    # Small synthetic graph: N nodes, F input features, H hidden, C classes.
    N, F, H, C = 256, 16, 32, 8

    key = jax.random.PRNGKey(0)
    k_x, k_adj, k_w1, k_b1, k_w2, k_b2 = jax.random.split(key, 6)

    x = jax.random.normal(k_x, (N, F), dtype=jnp.float32)

    # Random sparse-ish symmetric 0/1 adjacency, no self loops (matches
    # SparseTensor(adj1 - id) that the PyTorch forward passes to GINConv).
    dense = jax.random.uniform(k_adj, (N, N))
    adj = (dense < 0.05).astype(jnp.float32)
    adj = jnp.maximum(adj, adj.T)
    adj = adj * (1.0 - jnp.eye(N, dtype=jnp.float32))

    # Parameters stored pre-transposed as [in, out].
    w1 = (jax.random.uniform(k_w1, (F, H), dtype=jnp.float32) - 0.5) * (2.0 / jnp.sqrt(F))
    b1 = (jax.random.uniform(k_b1, (1, H), dtype=jnp.float32) - 0.5) * (2.0 / jnp.sqrt(F))
    w2 = (jax.random.uniform(k_w2, (H, C), dtype=jnp.float32) - 0.5) * (2.0 / jnp.sqrt(H))
    b2 = (jax.random.uniform(k_b2, (1, C), dtype=jnp.float32) - 0.5) * (2.0 / jnp.sqrt(H))

    # Exact (f32 accumulation class) path.
    out = jax.block_until_ready(gin_forward(adj, x, w1, b1, w2, b2))
    ref = _reference(adj, x, w1, b1, w2, b2)
    assert out.shape == (N, C)
    assert jnp.allclose(out, ref, atol=1e-4, rtol=1e-4), (
        float(jnp.max(jnp.abs(out - ref))))

    # Optional inference path: native bf16 MXU aggregation, halved streams.
    out_bf16 = jax.block_until_ready(
        gin_forward(adj, x, w1, b1, w2, b2, agg_in_bf16=True))
    ref_bf16 = _reference_bf16(adj, x, w1, b1, w2, b2)
    assert jnp.allclose(out_bf16, ref_bf16, atol=1e-2, rtol=1e-2), (
        float(jnp.max(jnp.abs(out_bf16 - ref_bf16))))

    # TODO(synk): quantized path (my_QLinear / QuantMeasure) not modeled; the
    # module's default (quant=False) forward uses plain Linear layers.
    print("KERNEL_OK")
</pallas_src>

<mosaic_0001>
module attributes {stable_mosaic.version = 11 : i64} {
  func.func @gin_layer1_kernel(%arg0: i32, %arg1: i32, %arg2: memref<128x256xbf16, #tpu.memory_space<vmem>>, %arg3: memref<256x128xf32, #tpu.memory_space<vmem>>, %arg4: memref<1x128xf32, #tpu.memory_space<vmem>>, %arg5: memref<128x128xf32, #tpu.memory_space<vmem>>, %arg6: memref<128x128xf32, #tpu.memory_space<vmem>>, %arg7: memref<128x128xf32, #tpu.memory_space<vmem>>) attributes {dimension_semantics = [#tpu.dimension_semantics<parallel>, #tpu.dimension_semantics<arbitrary>], iteration_bounds = array<i64: 2, 1>, scalar_prefetch = 0 : i64, scratch_operands = 1 : i64, tpu.core_type = #tpu.core_type<tc>, window_params = [{transform_indices = @transform_0, window_bounds = array<i64: 128, 256>}, {pipeline_mode = #tpu.pipeline_mode<synchronous>, transform_indices = @transform_1, window_bounds = array<i64: 256, 128>}, {pipeline_mode = #tpu.pipeline_mode<synchronous>, transform_indices = @transform_2, window_bounds = array<i64: 1, 128>}, {pipeline_mode = #tpu.pipeline_mode<synchronous>, transform_indices = @transform_3, window_bounds = array<i64: 128, 128>}, {transform_indices = @transform_4, window_bounds = array<i64: 128, 128>}]} {
    %c0_i32 = arith.constant 0 : i32
    %0 = arith.cmpi eq, %arg1, %c0_i32 : i32
    %1 = arith.extui %0 : i1 to i32
    %c0_i32_0 = arith.constant 0 : i32
    %2 = arith.cmpi ne, %1, %c0_i32_0 : i32
    scf.if %2 {
      %cst_9 = arith.constant 0.000000e+00 : f32
      %16 = vector.broadcast %cst_9 : f32 to vector<128x128xf32>
      %c0_10 = arith.constant 0 : index
      %c0_11 = arith.constant 0 : index
      %17 = vector.load %arg7[%c0_10, %c0_11] : memref<128x128xf32, #tpu.memory_space<vmem>>, vector<128x128xf32>
      tpu.vector_store %arg7[%c0_10, %c0_11], %16 {strides = array<i32>} : memref<128x128xf32, #tpu.memory_space<vmem>>, vector<128x128xf32>,
    } else {
    }
    %c0 = arith.constant 0 : index
    %c0_1 = arith.constant 0 : index
    %3 = vector.load %arg2[%c0, %c0_1] : memref<128x256xbf16, #tpu.memory_space<vmem>>, vector<128x256xbf16>
    %c256_i32 = arith.constant 256 : i32
    %4 = arith.muli %arg1, %c256_i32 : i32
    %5 = tpu.assume_multiple %4, 256 : i32
    %6 = arith.index_cast %5 : i32 to index
    %c0_2 = arith.constant 0 : index
    %7 = vector.load %arg3[%6, %c0_2] : memref<256x128xf32, #tpu.memory_space<vmem>>, vector<256x128xf32>
    %8 = arith.extf %3 : vector<128x256xbf16> to vector<128x256xf32>
    %c0_3 = arith.constant 0 : index
    %c0_4 = arith.constant 0 : index
    %9 = vector.load %arg7[%c0_3, %c0_4] : memref<128x128xf32, #tpu.memory_space<vmem>>, vector<128x128xf32>
    %cst = arith.constant dense<0.000000e+00> : vector<128x128xf32>
    %10 = tpu.matmul %8, %7, %cst {dimension_numbers = #tpu.dot_dimension_numbers<[1], [0], [0], [1], [0, 0, 1, 1], [], []>} : vector<128x256xf32>, vector<256x128xf32>, vector<128x128xf32> -> vector<128x128xf32>
    %11 = arith.addf %9, %10 : vector<128x128xf32>
    %c0_5 = arith.constant 0 : index
    %c0_6 = arith.constant 0 : index
    %12 = vector.load %arg7[%c0_5, %c0_6] : memref<128x128xf32, #tpu.memory_space<vmem>>, vector<128x128xf32>
    tpu.vector_store %arg7[%c0_5, %c0_6], %11 {strides = array<i32>} : memref<128x128xf32, #tpu.memory_space<vmem>>, vector<128x128xf32>,
    %c0_i32_7 = arith.constant 0 : i32
    %13 = arith.cmpi eq, %arg1, %c0_i32_7 : i32
    %14 = arith.extui %13 : i1 to i32
    %c0_i32_8 = arith.constant 0 : i32
    %15 = arith.cmpi ne, %14, %c0_i32_8 : i32
    scf.if %15 {
      %c0_9 = arith.constant 0 : index
      %c0_10 = arith.constant 0 : index
      %16 = vector.load %arg7[%c0_9, %c0_10] : memref<128x128xf32, #tpu.memory_space<vmem>>, vector<128x128xf32>
      %c0_11 = arith.constant 0 : index
      %c0_12 = arith.constant 0 : index
      %17 = vector.load %arg4[%c0_11, %c0_12] : memref<1x128xf32, #tpu.memory_space<vmem>>, vector<1x128xf32>
      %18 = vector.broadcast %17 : vector<1x128xf32> to vector<128x128xf32>
      %19 = arith.addf %16, %18 : vector<128x128xf32>
      %cst_13 = arith.constant 0.000000e+00 : f32
      %20 = vector.broadcast %cst_13 : f32 to vector<128x128xf32>
      %21 = arith.maximumf %19, %20 : vector<128x128xf32>
      %c0_14 = arith.constant 0 : index
      %c0_15 = arith.constant 0 : index
      %22 = vector.load %arg5[%c0_14, %c0_15] : memref<128x128xf32, #tpu.memory_space<vmem>>, vector<128x128xf32>
      %cst_16 = arith.constant dense<0.000000e+00> : vector<128x128xf32>
      %23 = tpu.matmul %21, %22, %cst_16 {dimension_numbers = #tpu.dot_dimension_numbers<[1], [0], [0], [1], [0, 0, 1, 1], [], []>} : vector<128x128xf32>, vector<128x128xf32>, vector<128x128xf32> -> vector<128x128xf32>
      %c0_17 = arith.constant 0 : index
      %c0_18 = arith.constant 0 : index
      %24 = vector.load %arg6[%c0_17, %c0_18] : memref<128x128xf32, #tpu.memory_space<vmem>>, vector<128x128xf32>
      tpu.vector_store %arg6[%c0_17, %c0_18], %23 {strides = array<i32>} : memref<128x128xf32, #tpu.memory_space<vmem>>, vector<128x128xf32>,
    } else {
    }
    return
  }
  func.func @transform_0(%arg0: i32, %arg1: i32) -> (i32, i32) {
    %c0_i32 = arith.constant 0 : i32
    return %arg0, %arg1 : i32, i32
  }
  func.func @transform_1(%arg0: i32, %arg1: i32) -> (i32, i32) {
    %c0_i32 = arith.constant 0 : i32
    %c0_i32_0 = arith.constant 0 : i32
    %c0_i32_1 = arith.constant 0 : i32
    return %c0_i32, %c0_i32_0 : i32, i32
  }
  func.func @transform_2(%arg0: i32, %arg1: i32) -> (i32, i32) {
    %c0_i32 = arith.constant 0 : i32
    %c0_i32_0 = arith.constant 0 : i32
    %c0_i32_1 = arith.constant 0 : i32
    return %c0_i32, %c0_i32_0 : i32, i32
  }
  func.func @transform_3(%arg0: i32, %arg1: i32) -> (i32, i32) {
    %c0_i32 = arith.constant 0 : i32
    %c0_i32_0 = arith.constant 0 : i32
    %c0_i32_1 = arith.constant 0 : i32
    return %c0_i32, %c0_i32_0 : i32, i32
  }
  func.func @transform_4(%arg0: i32, %arg1: i32) -> (i32, i32) {
    %c0_i32 = arith.constant 0 : i32
    %c0_i32_0 = arith.constant 0 : i32
    return %arg0, %c0_i32 : i32, i32
  }
}

</mosaic_0001>

<bundles_post_ra>
// kernel: tpu_custom_call.1
= control target key start
LH: loop header
LB: loop body
LE: loop exit
PB: predicated region body
PF: predicated region fallthrough
CT: control target
= control target key end

     0   :  { %9 = vsyncpa [#allocation4], 0  ;;  %s1794_s0 = inlined_call_operand.hbm [shape: bf16[256,256], index: 0, kind: input, shape index: {}]   ;;  %s1795_s1 = inlined_call_operand.hbm [shape: f32[256,128], index: 1, kind: input, shape index: {}]   ;;  %s1796_s2 = inlined_call_operand.vmem [shape: f32[1,128], index: 2, kind: input, shape index: {}]   ;;  %s1797_s3 = inlined_call_operand.hbm [shape: f32[128,128], index: 3, kind: input, shape index: {}]   ;;  %s1798_s4 = inlined_call_operand.hbm [shape: f32[256,128], index: 4, kind: output, shape index: {}]  }
   0x1   :  { %11 = vsyncpa [#allocation4 + $0x1], 0 }
   0x2   :  { %12 = vsyncpa [#allocation7], 0 }
   0x3   :  { %13 = vsyncpa [#allocation5], 0 }
   0x4   :  { %15 = vsyncpa [#allocation5 + $0x1], 0  ;;  %s1464_s15 = smov 0   ;;  %s1466_s16 = smov 0  }
   0x5   :  { %s1468_s17 = smov 0   ;;  %s1470_s18 = smov 0  }
   0x6   :  { %s1472_s19 = smov 0   ;;  %s1474_s20 = smov 0  }
   0x7 LB: > { %s914_s21 = sadd.s32 4294967295, %s1429_s20   ;;  %s915_s22 = sadd.s32 4294967294, %s1429_s20   ;;  %s1429_s20 = sphi %s1474_s20, %s21_s20   ;;  %s1425_s19 = sphi %s1472_s19, %s1820_s19   ;;  %s1421_s18 = sphi %s1470_s18, %s1819_s18   ;;  %s1417_s17 = sphi %s1468_s17, %s1818_s17   ;;  %s1413_s16 = sphi %s1466_s16, %s1817_s16   ;;  %s1409_s15 = sphi %s1464_s15, %s1816_s15  }
   0x8   : > { %p55_p0 = scmp.ne.s32.totalorder %s1413_s16, %s1409_s15  ;;  %p1498_p1 = scmp.eq.s32.totalorder %s914_s21, 0 }
   0x9   : > { %p1502_p2 = scmp.eq.s32.totalorder %s914_s21, 1  ;;  %p148_p3 = scmp.eq.s32.totalorder %s915_s22, 1 }
   0xa   : > { %s1803_s23 = scalar_select %p1498_p1, 1, 0 }
   0xb   : > { %p1508_p4 = por %p1498_p1, %p55_p0  ;;  %p916_p5 = scmp.ge.s32.totalorder %s1429_s20, 1 }
   0xc   : > { %p1513_p6 = por %p148_p3, %p55_p0  ;;  %p155_p7 = scmp.lt.s32.totalorder %s1429_s20, 3 }
   0xd   : > { %s1805_s25 = scalar_select %p1508_p4, 1, 0 }
   0xe   : > { %s1806_s26 = scalar_select %p1513_p6, 1, 0 }
   0xf   : > { %p1518_p8 = pnand %p916_p5, %p155_p7  ;;  %s1431_s28 = smov [#allocation6]  }
  0x10   : > { %s167_s29 = sshll.u32 %s1431_s28, 4  ;;  %s1432_s5 = smov [#allocation8]   ;;  %s1522_s29 = int_to_ptr.vmem [resolvable:$true] %s167_s29 }
  0x11   : > { %p1182_p9 = pneg %p1518_p8  ;;  %s183_s6 = sshll.u32 %s1432_s5, 4  ;;  %s1533_s6 = int_to_ptr.vmem [resolvable:$true] %s183_s6 }
  0x12   : > { %s1257_s9 = scalar_lea.hbm %s1795_s1, 4096 }
  0x13   : > { %p1529_p11 = pnand %p1182_p9, %p1498_p1  ;;  %p1258_p12 = scmp.ne.s32.totalorder %s1795_s1, %s1257_s9 }
  0x14   : > { %p1264_p5 = scmp.lt.u32.totalorder %s1257_s9, %s1795_s1 }
  0x15   : > { %p1259_p13 = pneg %p1529_p11 }
  0x17   : > { %p1260_p0 = pnand %p1259_p13, %p1258_p12 }
  0x19   : > { %p1261_p3 = pneg %p1260_p0 }
  0x1b   : > { %p1266_p7 = pnand %p1264_p5, %p1261_p3 }
  0x1d   : > { %1269 = shalt.err (!%p1266_p7)
}
  0x1e   : > { %s1270_s14 = scalar_lea.vmem %s1522_s29, 4096  ;;  %p1278_p1 = scmp.lt.s32.totalorder %s1522_s29, %s1522_s29 }
  0x1f   : > { %p1271_p9 = scmp.ne.s32.totalorder %s1522_s29, %s1270_s14  ;;  %p1279_p12 = scmp.lt.s32.totalorder %s1270_s14, %s1270_s14 }
  0x21   : > { %p1273_p10 = pnand %p1271_p9, %p1259_p13  ;;  %p1280_p0 = por %p1279_p12, %p1278_p1 }
  0x23   : > { %p1274_p6 = pneg %p1273_p10 }
  0x25   : > { %p1281_p4 = pnand %p1280_p0, %p1274_p6 }
  0x27   : > { %1284 = shalt.err (!%p1281_p4)
}
  0x28   : > { %s1433_s21 = smov 128   ;;  %s1434_s22 = smov 8  }
  0x29   : > { %1185 = dma.hbm_to_vmem [thread:$0]  (!%p1529_p11), %s1795_s1, 4096, %s1522_s29, [#allocation7], %s1433_s21, %s1433_s21, %s1434_s22  }
  0x2a   : > { %s1285_s9 = scalar_lea.hbm %s1797_s3, 2048 }
  0x2b   : > { %p1286_p1 = scmp.ne.s32.totalorder %s1797_s3, %s1285_s9  ;;  %p1292_p10 = scmp.lt.u32.totalorder %s1285_s9, %s1797_s3 }
  0x2d   : > { %p1288_p4 = pnand %p1286_p1, %p1259_p13 }
  0x2f   : > { %p1289_p6 = pneg %p1288_p4 }
  0x31   : > { %p1294_p3 = pnand %p1292_p10, %p1289_p6 }
  0x33   : > { %1297 = shalt.err (!%p1294_p3)
}
  0x34   : > { %s1298_s29 = scalar_lea.vmem %s1533_s6, 2048  ;;  %p1306_p12 = scmp.lt.s32.totalorder %s1533_s6, %s1533_s6 }
  0x35   : > { %p1299_p5 = scmp.ne.s32.totalorder %s1533_s6, %s1298_s29  ;;  %p1307_p0 = scmp.lt.s32.totalorder %s1298_s29, %s1298_s29 }
  0x37   : > { %p1301_p7 = pnand %p1299_p5, %p1259_p13  ;;  %p1308_p1 = por %p1307_p0, %p1306_p12 }
  0x39   : > { %p1302_p9 = pneg %p1301_p7 }
  0x3b   : > { %p1309_p4 = pnand %p1308_p1, %p1302_p9 }
  0x3d   : > { %1312 = shalt.err (!%p1309_p4)
}
  0x3e   : > { %1188 = dma.hbm_to_vmem [thread:$0]  (!%p1529_p11), %s1797_s3, 2048, %s1533_s6, [#allocation7], %s1433_s21, %s1433_s21, %s1434_s22  }
  0x3f   : > { %s33_s30 = sadd.s32 1, %s1425_s19  ;;  %s42_s5 = sadd.s32 1, %s1417_s17 }
  0x40   : > { %p35_p13 = scmp.ge.s32.totalorder %s33_s30, 2  ;;  %p49_p6 = scmp.ne.s32.totalorder %s1417_s17, %s1413_s16 }
  0x41   : > { %p50_p10 = scmp.eq.s32.totalorder %s1429_s20, 0  ;;  %p1199_p3 = scmp.lt.s32.totalorder %s1429_s20, 2 }
  0x42   : > { %s1822_s30 = smov (%p35_p13, %s33_s30), 0  ;;  %p1603_p7 = por %p1502_p2, %p49_p6 }
  0x43   : > { %p51_p5 = por %p50_p10, %p49_p6  ;;  %s37_s8 = ssub.s32 %s1425_s19, %s1822_s30 }
  0x44   : > { %s1809_s7 = scalar_select %p1603_p7, 1, 0 }
  0x45   : > { %s197_s9 = sand.u32 1, %s1417_s17   ;;  %p40_p9 = scmp.eq.s32.totalorder %s37_s8, 0 }
  0x46   : > { %s920_s6 = sshll.u32 %s197_s9, 7  ;;  %s936_s10 = sshll.u32 %s1425_s19, 11 }
  0x47   : > { %s1612_s11 = scalar_select %p40_p9, %s1417_s17, %s42_s5  }
  0x48   : > { %s1617_s29 = scalar_lea.hbm %s1794_s0, %s936_s10  ;;  %s201_s24 = scalar_lea.vmem [#allocation3], %s920_s6 }
  0x49   : > { %s211_s14 = sshll.u32 %s201_s24, 4  ;;  %p1621_p2 = pnand %p1199_p3, %p51_p5  ;;  %s1625_s14 = int_to_ptr.vmem [resolvable:$true] %s211_s14 }
  0x4a   : > { %s1627_s5 = scalar_lea.sflag [#allocation4], %s197_s9  ;;  %s1313_s8 = scalar_lea.hbm %s1617_s29, 2048 }
  0x4b   : > { %p1314_p11 = scmp.ne.s32.totalorder %s1617_s29, %s1313_s8  ;;  %p1315_p12 = pneg %p1621_p2 }
  0x4c   : > { %s1318_s12 = scalar_lea.hbm %s1794_s0, 4096  ;;  %p1319_p4 = scmp.lt.u32.totalorder %s1617_s29, %s1794_s0 }
  0x4d   : > { %p1316_p0 = pnand %p1315_p12, %p1314_p11  ;;  %p1320_p13 = scmp.lt.u32.totalorder %s1318_s12, %s1313_s8 }
  0x4e   : > { %p1322_p10 = scmp.lt.u32.totalorder %s1313_s8, %s1617_s29 }
  0x4f   : > { %p1317_p1 = pneg %p1316_p0  ;;  %p1321_p6 = por %p1320_p13, %p1319_p4 }
  0x51   : > { %p1323_p3 = por %p1322_p10, %p1321_p6 }
  0x53   : > { %p1324_p5 = pnand %p1323_p3, %p1317_p1 }
  0x55   : > { %1327 = shalt.err (!%p1324_p5)
}
  0x56   : > { %s1328_s9 = scalar_lea.vmem %s1625_s14, 2048  ;;  %s1435_s6 = smov [#allocation3]  }
  0x57   : > { %p1329_p9 = scmp.ne.s32.totalorder %s1625_s14, %s1328_s9  ;;  %s1333_s10 = sshll.u32 %s1435_s6, 4  ;;  %s1334_s10 = int_to_ptr.vmem [resolvable:$false] %s1333_s10 }
  0x58   : > { %s1335_s13 = scalar_lea.vmem %s1334_s10, 4096  ;;  %p1336_p7 = scmp.lt.s32.totalorder %s1625_s14, %s1334_s10 }
  0x59   : > { %p1331_p11 = pnand %p1329_p9, %p1315_p12  ;;  %p1337_p4 = scmp.lt.s32.totalorder %s1335_s13, %s1328_s9 }
  0x5b   : > { %p1332_p0 = pneg %p1331_p11  ;;  %p1338_p13 = por %p1337_p4, %p1336_p7 }
  0x5d   : > { %p1339_p6 = pnand %p1338_p13, %p1332_p0 }
  0x5f   : > { %1342 = shalt.err (!%p1339_p6)
}
  0x60   : > { %1192 = dma.hbm_to_vmem [thread:$0]  (!%p1621_p2), %s1617_s29, 2048, %s1625_s14, %s1627_s5, %s1433_s21, %s1433_s21, %s1434_s22  }
  0x61   : > { %223 = sbr.rel (%p1518_p8) target bundleno = 650 (0x28a), region = 36  ;;  %s1661_s8 = sand.u32 (!%p1518_p8), 1, %s1413_s16  }
  0x62   : > { %s925_s12 = sshll.u32 (!%p1518_p8), %s1661_s8, 7  ;;  %s226_s24 = scalar_lea.sflag (!%p1518_p8), [#allocation4], %s1661_s8 }
  0x63   : > { %s1667_s28 = scalar_lea.vmem (!%p1518_p8), [#allocation3], %s925_s12  ;;  %p1811_p7 = scmp.ne.s32.totalorder (!%p1518_p8), %s1805_s25, 0 }
  0x68   : > { %1396 = dma.done.wait (%p1811_p7), %s226_s24, 2048  }
  0x69   : > { %1398 = vsyncadd (%p1811_p7), %s226_s24, 4294965248  ;;  %p1812_p2 = scmp.ne.s32.totalorder %s1803_s23, 0 }
  0x6b   : > { %1400 = dma.done.wait (%p1812_p2), [#allocation7], 6144  }
  0x6c   : > { %1402 = vsyncadd (%p1812_p2), [#allocation7], 4294961152  ;;  %v319_v0 = vld [vmem:[#allocation6 + $0x80] sm:$0xff]  ;;  %v320_v1 = vld [vmem:[#allocation6 + $0x88] sm:$0xff]  ;;  %s1720_s27 = scalar_lea.vmem [#allocation9], %s925_s12  ;;  %s937_s21 = sshll.u32 %s1421_s18, 11 }
  0x6d   : > { %v303_v2 = vld [vmem:[#allocation6] sm:$0xff]  ;;  %v1106_v3 = vpack.c.bf16 %v320_v1, %v319_v0  ;;  %v304_v4 = vld [vmem:[#allocation6 + $0x8] sm:$0xff]  ;;  %v321_v5 = vld [vmem:[#allocation6 + $0x90] sm:$0xff]  ;;  %s809_s22 = sshll.u32 %s1720_s27, 4  ;;  %s1741_s5 = scalar_lea.hbm %s1798_s4, %s937_s21  ;;  %s1743_s22 = int_to_ptr.vmem [resolvable:$true] %s809_s22 }
  0x6e   : > { %v322_v6 = vld [vmem:[#allocation6 + $0x98] sm:$0xff]  ;;  %v1108_v7 = vpack.c.bf16 %v304_v4, %v303_v2  ;;  %v305_v9 = vld [vmem:[#allocation6 + $0x10] sm:$0xff]  ;;  %v323_v11 = vld [vmem:[#allocation6 + $0xa0] sm:$0xff]  ;;  %s796_s9 = scalar_lea.sflag [#allocation5], %s1661_s8  ;;  %s1343_s6 = scalar_lea.vmem %s1743_s22, 2048 }
  0x6f   : > { %v1110_v8 = vpack.c.bf16 %v322_v6, %v321_v5  ;;  %v306_v10 = vld [vmem:[#allocation6 + $0x18] sm:$0xff]  ;;  %1107 = vmatprep.subr.bf16.mxu0 %v1106_v3  ;;  %v324_v12 = vld [vmem:[#allocation6 + $0xa8] sm:$0xff]  ;;  %v307_v15 = vld [vmem:[#allocation6 + $0x20] sm:$0xff]  ;;  %p1344_p8 = scmp.ne.s32.totalorder %s1743_s22, %s1343_s6  ;;  %p1813_p12 = scmp.ne.s32.totalorder %s1809_s7, 0 }
  0x70   : > { %1109 = vmatpush3.bf16.msra.mxu0 %v1108_v7  ;;  %v1112_v13 = vpack.c.bf16 %v306_v10, %v305_v9  ;;  %v1114_v14 = vpack.c.bf16 %v324_v12, %v323_v11  ;;  %v308_v16 = vld [vmem:[#allocation6 + $0x28] sm:$0xff]  ;;  %v325_v17 = vld [vmem:[#allocation6 + $0xb0] sm:$0xff]  ;;  %v326_v18 = vld [vmem:[#allocation6 + $0xb8] sm:$0xff]  ;;  %s1436_s18 = smov [#allocation9]  }
  0x71   : > { %1111 = vmatprep.subr.bf16.mxu0 %v1110_v8  ;;  %v1116_v19 = vpack.c.bf16 %v308_v16, %v307_v15  ;;  %v1118_v20 = vpack.c.bf16 %v326_v18, %v325_v17  ;;  %v309_v21 = vld [vmem:[#allocation6 + $0x30] sm:$0xff]  ;;  %v310_v22 = vld [vmem:[#allocation6 + $0x38] sm:$0xff]  ;;  %v327_v23 = vld [vmem:[#allocation6 + $0xc0] sm:$0xff]  ;;  %p1345_p1 = pnand %p1344_p8, %p1813_p12  ;;  %s1347_s10 = sshll.u32 %s1436_s18, 4  ;;  %s1348_s10 = int_to_ptr.vmem [resolvable:$false] %s1347_s10 }
  0x72   : > { %v328_v24 = vld [vmem:[#allocation6 + $0xc8] sm:$0xff]  ;;  %v1678_v25 = vld [vmem:[%s1667_s28] sm:$0xff]  ;;  %v1120_v27 = vpack.c.bf16 %v310_v22, %v309_v21  ;;  %v329_v31 = vld [vmem:[#allocation6 + $0xd0] sm:$0xff]  ;;  %s1349_s13 = scalar_lea.vmem %s1348_s10, 4096  ;;  %p1350_p3 = scmp.lt.s32.totalorder %s1743_s22, %s1348_s10 }
  0x73   : > { %v336_v26 = vunpack.c.h.bf16 %v1678_v25  ;;  %v1122_v28 = vpack.c.bf16 %v328_v24, %v327_v23  ;;  %v311_v29 = vld [vmem:[#allocation6 + $0x40] sm:$0xff]  ;;  %v312_v30 = vld [vmem:[#allocation6 + $0x48] sm:$0xff]  ;;  %v330_v32 = vld [vmem:[#allocation6 + $0xd8] sm:$0xff]  ;;  %v335_v1 = vunpack.c.l.bf16 %v1678_v25  ;;  %p1346_p10 = pneg %p1345_p1  ;;  %p1351_p5 = scmp.lt.s32.totalorder %s1349_s13, %s1343_s6 }
  0x74   : > { %1113 = vmatpush3.bf16.msra.mxu0 %v1112_v13  ;;  %v1124_v33 = vpack.c.bf16 %v312_v30, %v311_v29  ;;  %v618_v34 = vld [vmem:[#allocation8] sm:$0xff]  ;;  %v619_v35 = vld [vmem:[#allocation8 + $0x8] sm:$0xff]  ;;  %v620_v36 = vld [vmem:[#allocation8 + $0x10] sm:$0xff]  ;;  %v1126_v37 = vpack.c.bf16 %v330_v32, %v329_v31 }
  0x75   : > { %1115 = vmatprep.subr.bf16.mxu0 %v1114_v14  ;;  %447 = vmatprep.mubr.f32.mxu0 %v336_v26  ;;  %v313_v38 = vld [vmem:[#allocation6 + $0x50] sm:$0xff]  ;;  %v314_v39 = vld [vmem:[#allocation6 + $0x58] sm:$0xff]  ;;  %v331_v41 = vld [vmem:[#allocation6 + $0xe0] sm:$0xff]  ;;  %v1138_v43 = vpack.c.bf16 %v619_v35, %v618_v34  ;;  %p1352_p9 = por %p1351_p5, %p1350_p3 }
  0x76   : > { %v621_v40 = vld [vmem:[#allocation8 + $0x18] sm:$0xff]  ;;  %v332_v42 = vld [vmem:[#allocation6 + $0xe8] sm:$0xff]  ;;  %v1128_v45 = vpack.c.bf16 %v314_v39, %v313_v38  ;;  %v622_v46 = vld [vmem:[#allocation8 + $0x20] sm:$0xff] }
  0x77   : > { %v1142_v44 = vpack.c.bf16 %v621_v40, %v620_v36  ;;  %v623_v47 = vld [vmem:[#allocation8 + $0x28] sm:$0xff]  ;;  %v1130_v48 = vpack.c.bf16 %v332_v42, %v331_v41  ;;  %v315_v49 = vld [vmem:[#allocation6 + $0x60] sm:$0xff]  ;;  %1139 = vmatprep.subr.bf16.mxu1 %v1138_v43  ;;  %v333_v51 = vld [vmem:[#allocation6 + $0xf0] sm:$0xff]  ;;  %p1353_p11 = pnand %p1352_p9, %p1346_p10 }
  0x78   : > { %1117 = vmatpush3.bf16.msra.mxu0 %v1116_v19  ;;  %v316_v50 = vld [vmem:[#allocation6 + $0x68] sm:$0xff]  ;;  %v334_v52 = vld [vmem:[#allocation6 + $0xf8] sm:$0xff]  ;;  %1141 = vmatpush3.bf16.msra.mxu1 %v1138_v43  ;;  %v1146_v53 = vpack.c.bf16 %v623_v47, %v622_v46  ;;  %v624_v55 = vld [vmem:[#allocation8 + $0x30] sm:$0xff] }
  0x79   : > { %1119 = vmatprep.subr.bf16.mxu0 %v1118_v20  ;;  %1143 = vmatprep.subr.bf16.mxu1 %v1142_v44  ;;  %v1132_v54 = vpack.c.bf16 %v316_v50, %v315_v49  ;;  %v625_v56 = vld [vmem:[#allocation8 + $0x38] sm:$0xff]  ;;  %v1134_v57 = vpack.c.bf16 %v334_v52, %v333_v51  ;;  %v317_v58 = vld [vmem:[#allocation6 + $0x70] sm:$0xff]  ;;  %v626_v62 = vld [vmem:[#allocation8 + $0x40] sm:$0xff] }
  0x7a   : > { %v318_v59 = vld [vmem:[#allocation6 + $0x78] sm:$0xff]  ;;  %v1150_v60 = vpack.c.bf16 %v625_v56, %v624_v55  ;;  %v627_v63 = vld [vmem:[#allocation8 + $0x48] sm:$0xff]  ;;  %v287_v4 = vld [vmem:[%s1667_s28 + $0x10] sm:$0xff] }
  0x7b   : > { %v1136_v61 = vpack.c.bf16 %v318_v59, %v317_v58  ;;  %v286_v0 = vld [vmem:[%s1667_s28 + $0x8] sm:$0xff]  ;;  %v1154_v2 = vpack.c.bf16 %v627_v63, %v626_v62  ;;  %v340_v6 = vunpack.c.h.bf16 %v287_v4  ;;  %v288_v7 = vld [vmem:[%s1667_s28 + $0x18] sm:$0xff]  ;;  %v339_v8 = vunpack.c.l.bf16 %v287_v4  ;;  %v289_v10 = vld [vmem:[%s1667_s28 + $0x20] sm:$0xff] }
  0x7c   : > { %1121 = vmatpush3.bf16.msra.mxu0 %v1120_v27  ;;  %1145 = vmatpush3.bf16.msra.mxu1 %v1142_v44  ;;  %v338_v3 = vunpack.c.h.bf16 %v286_v0  ;;  %v337_v5 = vunpack.c.l.bf16 %v286_v0  ;;  %v342_v9 = vunpack.c.h.bf16 %v288_v7  ;;  %v341_v11 = vunpack.c.l.bf16 %v288_v7  ;;  %v290_v13 = vld [vmem:[%s1667_s28 + $0x28] sm:$0xff]  ;;  %v291_v16 = vld [vmem:[%s1667_s28 + $0x30] sm:$0xff]  ;;  %v292_v19 = vld [vmem:[%s1667_s28 + $0x38] sm:$0xff] }
  0x7d   : > { %1123 = vmatprep.subr.bf16.mxu0 %v1122_v28  ;;  %1147 = vmatprep.subr.bf16.mxu1 %v1146_v53  ;;  %v344_v12 = vunpack.c.h.bf16 %v289_v10  ;;  %v343_v14 = vunpack.c.l.bf16 %v289_v10  ;;  %v346_v15 = vunpack.c.h.bf16 %v290_v13  ;;  %v345_v17 = vunpack.c.l.bf16 %v290_v13  ;;  %v293_v22 = vld [vmem:[%s1667_s28 + $0x40] sm:$0xff]  ;;  %v294_v25 = vld [vmem:[%s1667_s28 + $0x48] sm:$0xff]  ;;  %v295_v28 = vld [vmem:[%s1667_s28 + $0x50] sm:$0xff] }
  0x7e   : > { %v348_v18 = vunpack.c.h.bf16 %v291_v16  ;;  %v347_v20 = vunpack.c.l.bf16 %v291_v16  ;;  %v350_v21 = vunpack.c.h.bf16 %v292_v19  ;;  %v349_v23 = vunpack.c.l.bf16 %v292_v19  ;;  %v296_v31 = vld [vmem:[%s1667_s28 + $0x58] sm:$0xff]  ;;  %v297_v34 = vld [vmem:[%s1667_s28 + $0x60] sm:$0xff]  ;;  %v299_v40 = vld [vmem:[%s1667_s28 + $0x70] sm:$0xff] }
  0x7f   : > { %v352_v24 = vunpack.c.h.bf16 %v293_v22  ;;  %v351_v26 = vunpack.c.l.bf16 %v293_v22  ;;  %v354_v27 = vunpack.c.h.bf16 %v294_v25  ;;  %v353_v29 = vunpack.c.l.bf16 %v294_v25  ;;  %v300_v43 = vld [vmem:[%s1667_s28 + $0x78] sm:$0xff]  ;;  %v628_v47 = vld [vmem:[#allocation8 + $0x50] sm:$0xff]  ;;  %v630_v50 = vld [vmem:[#allocation8 + $0x60] sm:$0xff] }
  0x80   : > { %1125 = vmatpush3.bf16.msra.mxu0 %v1124_v33  ;;  %1149 = vmatpush3.bf16.msra.mxu1 %v1146_v53  ;;  %v356_v30 = vunpack.c.h.bf16 %v295_v28  ;;  %v355_v32 = vunpack.c.l.bf16 %v295_v28  ;;  %v358_v33 = vunpack.c.h.bf16 %v296_v31  ;;  %v357_v35 = vunpack.c.l.bf16 %v296_v31  ;;  %v631_v51 = vld [vmem:[#allocation8 + $0x68] sm:$0xff]  ;;  %v632_v53 = vld [vmem:[#allocation8 + $0x70] sm:$0xff]  ;;  %v1700_v58 = vld [vmem:[%s1796_s2] ss:$0 sm:$0xff] }
  0x81   : > { %1127 = vmatprep.subr.bf16.mxu0 %v1126_v37  ;;  %1151 = vmatprep.subr.bf16.mxu1 %v1150_v60  ;;  %v360_v36 = vunpack.c.h.bf16 %v297_v34  ;;  %v298_v37 = vld [vmem:[%s1667_s28 + $0x68] sm:$0xff]  ;;  %v359_v38 = vunpack.c.l.bf16 %v297_v34  ;;  %v364_v42 = vunpack.c.h.bf16 %v299_v40  ;;  %v363_v44 = vunpack.c.l.bf16 %v299_v40 }
  0x82   : > { %v362_v39 = vunpack.c.h.bf16 %v298_v37  ;;  %v361_v41 = vunpack.c.l.bf16 %v298_v37  ;;  %v365_v46 = vunpack.c.l.bf16 %v300_v43  ;;  %v1162_v52 = vpack.c.bf16 %v631_v51, %v630_v50 }
  0x84   : > { %1129 = vmatpush3.bf16.msra.mxu0 %v1128_v45  ;;  %1153 = vmatpush3.bf16.msra.mxu1 %v1150_v60  ;;  %v366_v45 = vunpack.c.h.bf16 %v300_v43 }
  0x85   : > { %1131 = vmatprep.subr.bf16.mxu0 %v1130_v48  ;;  %1155 = vmatprep.subr.bf16.mxu1 %v1154_v2  ;;  %v629_v48 = vld [vmem:[#allocation8 + $0x58] sm:$0xff] }
  0x86   : > { %v1158_v49 = vpack.c.bf16 %v629_v48, %v628_v47 }
  0x88   : > { %1133 = vmatpush3.bf16.msra.mxu0 %v1132_v54  ;;  %1157 = vmatpush3.bf16.msra.mxu1 %v1154_v2  ;;  %v633_v54 = vld [vmem:[#allocation8 + $0x78] sm:$0xff] }
  0x89   : > { %1135 = vmatprep.subr.bf16.mxu0 %v1134_v57  ;;  %1159 = vmatprep.subr.bf16.mxu1 %v1158_v49  ;;  %v1166_v55 = vpack.c.bf16 %v633_v54, %v632_v53 }
  0x8c   : > { %1137 = vmatpush3.bf16.msra.mxu0 %v1136_v61  ;;  %1161 = vmatpush3.bf16.msra.mxu1 %v1158_v49 }
  0x8d   : > { %1163 = vmatprep.subr.bf16.mxu1 %v1162_v52 }
  0x8f   : > { %448 = vmatmul.mubr.f32.vlgmr.msra.gmra.mrb[0].mxu0 %v335_v1 }
  0x90   : > { %452 = vmatprep.mubr.f32.mxu0 %v338_v3  ;;  %1165 = vmatpush3.bf16.msra.mxu1 %v1162_v52 }
  0x91   : > { %1167 = vmatprep.subr.bf16.mxu1 %v1166_v55 }
  0x93   : > { %453 = vmatmul.mubr.f32.gmra.mrb[2].mxu0 %v337_v5 }
  0x94   : > { %457 = vmatprep.mubr.f32.mxu0 %v340_v6  ;;  %1169 = vmatpush3.bf16.msra.mxu1 %v1166_v55 }
  0x97   : > { %458 = vmatmul.mubr.f32.gmra.mrb[4].mxu0 %v339_v8 }
  0x98   : > { %462 = vmatprep.mubr.f32.mxu0 %v342_v9 }
  0x9b   : > { %463 = vmatmul.mubr.f32.gmra.mrb[6].mxu0 %v341_v11 }
  0x9c   : > { %467 = vmatprep.mubr.f32.mxu0 %v344_v12 }
  0x9f   : > { %468 = vmatmul.mubr.f32.gmra.mrb[8].mxu0 %v343_v14 }
  0xa0   : > { %472 = vmatprep.mubr.f32.mxu0 %v346_v15 }
  0xa3   : > { %473 = vmatmul.mubr.f32.gmra.mrb[10].mxu0 %v345_v17 }
  0xa4   : > { %477 = vmatprep.mubr.f32.mxu0 %v348_v18 }
  0xa7   : > { %478 = vmatmul.mubr.f32.gmra.mrb[12].mxu0 %v347_v20 }
  0xa8   : > { %482 = vmatprep.mubr.f32.mxu0 %v350_v21 }
  0xab   : > { %483 = vmatmul.mubr.f32.gmra.mrb[14].mxu0 %v349_v23 }
  0xac   : > { %487 = vmatprep.mubr.f32.mxu0 %v352_v24 }
  0xaf   : > { %488 = vmatmul.mubr.f32.gmra.mrb[16].mxu0 %v351_v26 }
  0xb0   : > { %492 = vmatprep.mubr.f32.mxu0 %v354_v27 }
  0xb3   : > { %493 = vmatmul.mubr.f32.gmra.mrb[18].mxu0 %v353_v29 }
  0xb4   : > { %497 = vmatprep.mubr.f32.mxu0 %v356_v30 }
  0xb7   : > { %498 = vmatmul.mubr.f32.gmra.mrb[20].mxu0 %v355_v32 }
  0xb8   : > { %502 = vmatprep.mubr.f32.mxu0 %v358_v33 }
  0xbb   : > { %503 = vmatmul.mubr.f32.gmra.mrb[22].mxu0 %v357_v35 }
  0xbc   : > { %507 = vmatprep.mubr.f32.mxu0 %v360_v36 }
  0xbf   : > { %508 = vmatmul.mubr.f32.gmra.mrb[24].mxu0 %v359_v38 }
  0xc0   : > { %512 = vmatprep.mubr.f32.mxu0 %v362_v39 }
  0xc3   : > { %513 = vmatmul.mubr.f32.gmra.mrb[26].mxu0 %v361_v41 }
  0xc4   : > { %517 = vmatprep.mubr.f32.mxu0 %v364_v42 }
  0xc7   : > { %518 = vmatmul.mubr.f32.gmra.mrb[28].mxu0 %v363_v44 }
  0xc8   : > { %522 = vmatprep.mubr.f32.mxu0 %v366_v45 }
  0xcb   : > { %523 = vmatmul.mubr.f32.gmra.mrb[30].mxu0 %v365_v46 }
 0x162   : > { %v970_v56 = vpop.f32.mrb[0].mxu0 }
 0x163   : > { %v971_v57 = vpop.f32.mrb[1].mxu0 }
 0x164   : > { %v972_v59 = vadd.f32 %v971_v57, %v970_v56 }
 0x166   : > { %v973_v60 = vpop.f32.mrb[2].mxu0  ;;  %v586_v61 = vadd.f32 %v972_v59, %v1700_v58 }
 0x167   : > { %v974_v62 = vpop.f32.mrb[3].mxu0 }
 0x168   : > { %v975_v63 = vadd.f32 %v974_v62, %v973_v60  ;;  %v602_v0 = vmax.f32 %v586_v61, 0.0 }
 0x16a   : > { %v587_v1 = vadd.f32 %v975_v63, %v1700_v58  ;;  %v976_v2 = vpop.f32.mrb[4].mxu0  ;;  %1082 = vmatprep.mubr.f32.mxu1 %v602_v0 }
 0x16b   : > { %v977_v3 = vpop.f32.mrb[5].mxu0 }
 0x16c   : > { %v603_v4 = vmax.f32 %v587_v1, 0.0  ;;  %v978_v5 = vadd.f32 %v977_v3, %v976_v2 }
 0x16e   : > { %v588_v6 = vadd.f32 %v978_v5, %v1700_v58  ;;  %v979_v7 = vpop.f32.mrb[6].mxu0  ;;  %1083 = vmatmul.mubr.f32.vlgmr.msra.gmra.mrb[0].mxu1 %v603_v4 }
 0x16f   : > { %v980_v8 = vpop.f32.mrb[7].mxu0 }
 0x170   : > { %v604_v9 = vmax.f32 %v588_v6, 0.0  ;;  %v981_v10 = vadd.f32 %v980_v8, %v979_v7 }
 0x172   : > { %v589_v11 = vadd.f32 %v981_v10, %v1700_v58  ;;  %v982_v12 = vpop.f32.mrb[8].mxu0  ;;  %1085 = vmatprep.mubr.f32.mxu1 %v604_v9 }
 0x173   : > { %v983_v13 = vpop.f32.mrb[9].mxu0 }
 0x174   : > { %v605_v14 = vmax.f32 %v589_v11, 0.0  ;;  %v984_v15 = vadd.f32 %v983_v13, %v982_v12 }
 0x176   : > { %v590_v16 = vadd.f32 %v984_v15, %v1700_v58  ;;  %v985_v17 = vpop.f32.mrb[10].mxu0  ;;  %1086 = vmatmul.mubr.f32.gmra.mrb[2].mxu1 %v605_v14 }
 0x177   : > { %v986_v18 = vpop.f32.mrb[11].mxu0 }
 0x178   : > { %v606_v19 = vmax.f32 %v590_v16, 0.0  ;;  %v987_v20 = vadd.f32 %v986_v18, %v985_v17 }
 0x17a   : > { %v591_v21 = vadd.f32 %v987_v20, %v1700_v58  ;;  %v988_v22 = vpop.f32.mrb[12].mxu0  ;;  %1088 = vmatprep.mubr.f32.mxu1 %v606_v19 }
 0x17b   : > { %v989_v23 = vpop.f32.mrb[13].mxu0 }
 0x17c   : > { %v607_v24 = vmax.f32 %v591_v21, 0.0  ;;  %v990_v25 = vadd.f32 %v989_v23, %v988_v22 }
 0x17e   : > { %v592_v26 = vadd.f32 %v990_v25, %v1700_v58  ;;  %v991_v27 = vpop.f32.mrb[14].mxu0  ;;  %1089 = vmatmul.mubr.f32.gmra.mrb[4].mxu1 %v607_v24 }
 0x17f   : > { %v992_v28 = vpop.f32.mrb[15].mxu0 }
 0x180   : > { %v608_v29 = vmax.f32 %v592_v26, 0.0  ;;  %v993_v30 = vadd.f32 %v992_v28, %v991_v27 }
 0x182   : > { %v593_v31 = vadd.f32 %v993_v30, %v1700_v58  ;;  %v994_v32 = vpop.f32.mrb[16].mxu0  ;;  %1091 = vmatprep.mubr.f32.mxu1 %v608_v29 }
 0x183   : > { %v995_v33 = vpop.f32.mrb[17].mxu0 }
 0x184   : > { %v609_v34 = vmax.f32 %v593_v31, 0.0  ;;  %v996_v35 = vadd.f32 %v995_v33, %v994_v32 }
 0x186   : > { %v594_v36 = vadd.f32 %v996_v35, %v1700_v58  ;;  %v997_v37 = vpop.f32.mrb[18].mxu0  ;;  %1092 = vmatmul.mubr.f32.gmra.mrb[6].mxu1 %v609_v34 }
 0x187   : > { %v998_v38 = vpop.f32.mrb[19].mxu0 }
 0x188   : > { %v610_v39 = vmax.f32 %v594_v36, 0.0  ;;  %v999_v40 = vadd.f32 %v998_v38, %v997_v37 }
 0x18a   : > { %v595_v41 = vadd.f32 %v999_v40, %v1700_v58  ;;  %v1000_v42 = vpop.f32.mrb[20].mxu0  ;;  %1094 = vmatprep.mubr.f32.mxu1 %v610_v39 }
 0x18b   : > { %v1001_v43 = vpop.f32.mrb[21].mxu0 }
 0x18c   : > { %v611_v44 = vmax.f32 %v595_v41, 0.0  ;;  %v1002_v45 = vadd.f32 %v1001_v43, %v1000_v42 }
 0x18e   : > { %v596_v46 = vadd.f32 %v1002_v45, %v1700_v58  ;;  %v1003_v47 = vpop.f32.mrb[22].mxu0  ;;  %1095 = vmatmul.mubr.f32.gmra.mrb[8].mxu1 %v611_v44 }
 0x18f   : > { %v1004_v48 = vpop.f32.mrb[23].mxu0 }
 0x190   : > { %v612_v49 = vmax.f32 %v596_v46, 0.0  ;;  %v1005_v50 = vadd.f32 %v1004_v48, %v1003_v47 }
 0x192   : > { %v597_v51 = vadd.f32 %v1005_v50, %v1700_v58  ;;  %v1006_v52 = vpop.f32.mrb[24].mxu0  ;;  %1097 = vmatprep.mubr.f32.mxu1 %v612_v49 }
 0x193   : > { %v1007_v53 = vpop.f32.mrb[25].mxu0 }
 0x194   : > { %v613_v54 = vmax.f32 %v597_v51, 0.0  ;;  %v1008_v55 = vadd.f32 %v1007_v53, %v1006_v52 }
 0x196   : > { %v598_v56 = vadd.f32 %v1008_v55, %v1700_v58  ;;  %v1009_v57 = vpop.f32.mrb[26].mxu0  ;;  %1098 = vmatmul.mubr.f32.gmra.mrb[10].mxu1 %v613_v54 }
 0x197   : > { %v1010_v59 = vpop.f32.mrb[27].mxu0 }
 0x198   : > { %v614_v60 = vmax.f32 %v598_v56, 0.0  ;;  %v1011_v61 = vadd.f32 %v1010_v59, %v1009_v57 }
 0x19a   : > { %v599_v62 = vadd.f32 %v1011_v61, %v1700_v58  ;;  %v1012_v63 = vpop.f32.mrb[28].mxu0  ;;  %1100 = vmatprep.mubr.f32.mxu1 %v614_v60 }
 0x19b   : > { %v1013_v0 = vpop.f32.mrb[29].mxu0 }
 0x19c   : > { %v615_v1 = vmax.f32 %v599_v62, 0.0  ;;  %v1014_v2 = vadd.f32 %v1013_v0, %v1012_v63 }
 0x19e   : > { %v600_v3 = vadd.f32 %v1014_v2, %v1700_v58  ;;  %v1015_v4 = vpop.f32.mrb[30].mxu0  ;;  %1101 = vmatmul.mubr.f32.gmra.mrb[12].mxu1 %v615_v1 }
 0x19f   : > { %v1016_v5 = vpop.f32.mrb[31].mxu0 }
 0x1a0   : > { %v616_v6 = vmax.f32 %v600_v3, 0.0  ;;  %v1017_v7 = vadd.f32 %v1016_v5, %v1015_v4 }
 0x1a2   : > { %v601_v8 = vadd.f32 %v1017_v7, %v1700_v58  ;;  %1103 = vmatprep.mubr.f32.mxu1 %v616_v6 }
 0x1a4   : > { %v617_v9 = vmax.f32 %v601_v8, 0.0 }
 0x1a6   : > { %1104 = vmatmul.mubr.f32.gmra.mrb[14].mxu1 %v617_v9 }
 0x241   : > { %v1084_v10 = vpop.f32.mrb[0].mxu1 }
 0x242   : > { %780 = vst [vmem:[%s1720_s27 + $0x8] sm:$0xff] %v1084_v10  ;;  %v700_v11 = vpop.f32.mrb[1].mxu1 }
 0x243   : > { %779 = vst [vmem:[%s1720_s27] sm:$0xff] %v700_v11 }
 0x249   : > { %v1087_v58 = vpop.f32.mrb[2].mxu1 }
 0x24a   : > { %782 = vst [vmem:[%s1720_s27 + $0x18] sm:$0xff] %v1087_v58  ;;  %v710_v12 = vpop.f32.mrb[3].mxu1 }
 0x24b   : > { %781 = vst [vmem:[%s1720_s27 + $0x10] sm:$0xff] %v710_v12 }
 0x251   : > { %v1090_v13 = vpop.f32.mrb[4].mxu1 }
 0x252   : > { %784 = vst [vmem:[%s1720_s27 + $0x28] sm:$0xff] %v1090_v13  ;;  %v720_v14 = vpop.f32.mrb[5].mxu1 }
 0x253   : > { %783 = vst [vmem:[%s1720_s27 + $0x20] sm:$0xff] %v720_v14 }
 0x259   : > { %v1093_v15 = vpop.f32.mrb[6].mxu1 }
 0x25a   : > { %786 = vst [vmem:[%s1720_s27 + $0x38] sm:$0xff] %v1093_v15  ;;  %v730_v16 = vpop.f32.mrb[7].mxu1 }
 0x25b   : > { %785 = vst [vmem:[%s1720_s27 + $0x30] sm:$0xff] %v730_v16 }
 0x261   : > { %v1096_v17 = vpop.f32.mrb[8].mxu1 }
 0x262   : > { %788 = vst [vmem:[%s1720_s27 + $0x48] sm:$0xff] %v1096_v17  ;;  %v740_v18 = vpop.f32.mrb[9].mxu1 }
 0x263   : > { %787 = vst [vmem:[%s1720_s27 + $0x40] sm:$0xff] %v740_v18 }
 0x269   : > { %v1099_v19 = vpop.f32.mrb[10].mxu1 }
 0x26a   : > { %790 = vst [vmem:[%s1720_s27 + $0x58] sm:$0xff] %v1099_v19  ;;  %v750_v20 = vpop.f32.mrb[11].mxu1 }
 0x26b   : > { %789 = vst [vmem:[%s1720_s27 + $0x50] sm:$0xff] %v750_v20 }
 0x271   : > { %v1102_v21 = vpop.f32.mrb[12].mxu1 }
 0x272   : > { %792 = vst [vmem:[%s1720_s27 + $0x68] sm:$0xff] %v1102_v21  ;;  %v760_v22 = vpop.f32.mrb[13].mxu1 }
 0x273   : > { %791 = vst [vmem:[%s1720_s27 + $0x60] sm:$0xff] %v760_v22 }
 0x279   : > { %v1105_v23 = vpop.f32.mrb[14].mxu1 }
 0x27a   : > { %794 = vst [vmem:[%s1720_s27 + $0x78] sm:$0xff] %v1105_v23  ;;  %v770_v24 = vpop.f32.mrb[15].mxu1 }
 0x27b   : > { %793 = vst [vmem:[%s1720_s27 + $0x70] sm:$0xff] %v770_v24 }
 0x27c   : > { %1356 = shalt.err (!%p1353_p11)
}
 0x27d   : > { %s1357_s12 = scalar_lea.hbm %s1741_s5, 2048  ;;  %s1361_s23 = scalar_lea.hbm %s1798_s4, 4096 }
 0x27e   : > { %p1358_p0 = scmp.ne.s32.totalorder %s1741_s5, %s1357_s12  ;;  %p1362_p6 = scmp.lt.u32.totalorder %s1741_s5, %s1798_s4 }
 0x27f   : > { %p1363_p7 = scmp.lt.u32.totalorder %s1361_s23, %s1357_s12  ;;  %p1365_p8 = scmp.lt.u32.totalorder %s1357_s12, %s1741_s5 }
 0x280   : > { %p1359_p4 = pnand %p1358_p0, %p1813_p12 }
 0x281   : > { %p1364_p2 = por %p1363_p7, %p1362_p6 }
 0x282   : > { %p1360_p13 = pneg %p1359_p4 }
 0x283   : > { %p1366_p1 = por %p1365_p8, %p1364_p2 }
 0x285   : > { %p1367_p10 = pnand %p1366_p1, %p1360_p13 }
 0x287   : > { %1370 = shalt.err (!%p1367_p10)
}
 0x288   : > { %s1437_s21 = smov 128   ;;  %s1438_s29 = smov 8  }
 0x289   : > { %1180 = dma.vmem_to_hbm [thread:$0]  (%p1813_p12), %s1743_s22, 2048, %s1741_s5, %s796_s9, %s1437_s21, %s1437_s21, %s1438_s29  }
 0x28a PF: > { %s824_s14 = sand.u32 1, %s1409_s15   ;;  %p1814_p3 = scmp.ne.s32.totalorder %s1806_s26, 0 }
 0x28b   : > { %p1815_p5 = scmp.ge.s32.totalorder %s1429_s20, 2  ;;  %s825_s6 = scalar_lea.sflag [#allocation5], %s824_s14 }
 0x28d   : > { %p1194_p9 = pnand %p1815_p5, %p1814_p3 }
 0x28f   : > { %1404 = dma.done.wait (!%p1194_p9), %s825_s6, 2048  }
 0x290   : > { %1406 = vsyncadd (!%p1194_p9), %s825_s6, 4294965248  ;;  %s21_s20 = sadd.s32 1, %s1429_s20   ;;  %s1816_s15 = smov %s1413_s16 }
 0x291   : > { %p18_p11 = scmp.ge.s32.totalorder %s21_s20, 4   ;;  %s1817_s16 = smov %s1417_s17 }
 0x292   : > { %s1818_s17 = smov %s1612_s11  ;;  %s1819_s18 = smov %s1425_s19 }
 0x293   : > { %s1820_s19 = smov %s1822_s30  ;;  %20 = sbr.rel (!%p18_p11) target bundleno = 7 (0x7), region = 98 }
 0x29a   :  { %830 = vsyncpa [#allocation4], 1 }
 0x29b   :  { %832 = vsyncpa [#allocation4 + $0x1], 1 }
 0x29c   :  { %833 = vsyncpa [#allocation7], 1 }
 0x29d   :  { %834 = vsyncpa [#allocation5], 1 }
 0x29e   :  { %836 = vsyncpa [#allocation5 + $0x1], 1 }

</bundles_post_ra>
